<compile_context>
chip_gen: v5e
topology: v5e:2x2
jax: 0.10.0
libtpu: 0.0.40
codegen_flags: <defaults>
</compile_context>

<pallas_src>
import math
from functools import partial

import jax
import jax.numpy as jnp
from jax import lax
from jax.experimental import pallas as pl
from jax.experimental.pallas import tpu as pltpu

NEG_INF = -1e30          # finite stand-in for -inf (softmax-equivalent, NaN-safe)
LN_EPS = 1e-5            # matches PyTorch LayerNorm default

TOKEN_TILE_TARGET = 256  # rows of (B*S) per grid step for token-tiled kernels
SEQ_TILE_TARGET = 128    # q / kv tile for flash attention
VOCAB_TILE_TARGET = 1024 # lane-dense vocab tile for the logits kernel
# NOTE: for production, D (and dh) should be multiples of 128; the demo D=32 is tiny.


# ------------------------------ kernel helpers --------------------------------

def _mm(x, w):
    """x:(m,k) @ w:(n,k)^T -> (m,n).  bf16 MXU inputs, f32 accumulation,
    contraction on dim 1 of both operands so no explicit transpose is built."""
    return lax.dot_general(
        x.astype(jnp.bfloat16), w.astype(jnp.bfloat16),
        dimension_numbers=(((1,), (1,)), ((), ())),
        preferred_element_type=jnp.float32)


def _layer_norm(x, g, b, eps=LN_EPS):
    mu = jnp.mean(x, axis=-1, keepdims=True)
    var = jnp.mean((x - mu) ** 2, axis=-1, keepdims=True)
    return (x - mu) * lax.rsqrt(var + eps) * g + b


def _resident(shape):
    """BlockSpec that maps every grid point to the same (whole-array) block,
    so the weight is DMA'd once and stays resident in VMEM."""
    n = len(shape)
    return pl.BlockSpec(shape, lambda *_: (0,) * n)


# --------------------------------- kernels -------------------------------------

def _ln_qkv_kernel(x_ref, g_ref, b_ref,
                   wq_ref, bq_ref, wk_ref, bk_ref, wv_ref, bv_ref,
                   q_ref, k_ref, v_ref):
    """Pre-norm + QKV projection on a (token_tile, D) slab; q/k/v emitted as
    three separate matmul outputs (no sub-128 lane slicing of a fused qkv)."""
    h = _layer_norm(x_ref[...].astype(jnp.float32), g_ref[...], b_ref[...])
    q_ref[...] = (_mm(h, wq_ref[...]) + bq_ref[...]).astype(q_ref.dtype)
    k_ref[...] = (_mm(h, wk_ref[...]) + bk_ref[...]).astype(k_ref.dtype)
    v_ref[...] = (_mm(h, wv_ref[...]) + bv_ref[...]).astype(v_ref.dtype)


def _flash_attn_kernel(q_ref, k_ref, v_ref, o_ref, m_sc, l_sc, acc_sc,
                       *, scale, tq, tk):
    """Causal flash attention.  grid = (B*H, n_q_tiles, n_kv_tiles),
    KV axis innermost ('arbitrary'); online softmax state lives in VMEM scratch."""
    qi = pl.program_id(1)
    ki = pl.program_id(2)

    @pl.when(ki == 0)
    def _init():
        m_sc[...] = jnp.full_like(m_sc, NEG_INF)
        l_sc[...] = jnp.zeros_like(l_sc)
        acc_sc[...] = jnp.zeros_like(acc_sc)

    # Skip KV blocks lying entirely above the causal diagonal (block 0 never skips).
    @pl.when(ki * tk <= qi * tq + (tq - 1))
    def _compute():
        q = q_ref[0]                    # (tq, dh)  bf16
        k = k_ref[0]                    # (tk, dh)  bf16
        v = v_ref[0]                    # (tk, dh)  bf16
        s = lax.dot_general(q, k, (((1,), (1,)), ((), ())),
                            preferred_element_type=jnp.float32) * scale
        q_pos = qi * tq + lax.broadcasted_iota(jnp.int32, (tq, tk), 0)
        k_pos = ki * tk + lax.broadcasted_iota(jnp.int32, (tq, tk), 1)
        s = jnp.where(k_pos > q_pos, NEG_INF, s)

        m_prev = m_sc[...]
        m_new = jnp.maximum(m_prev, jnp.max(s, axis=-1, keepdims=True))
        alpha = jnp.exp(m_prev - m_new)
        p = jnp.exp(s - m_new)
        l_sc[...] = alpha * l_sc[...] + jnp.sum(p, axis=-1, keepdims=True)
        acc_sc[...] = alpha * acc_sc[...] + lax.dot_general(
            p.astype(jnp.bfloat16), v, (((1,), (0,)), ((), ())),
            preferred_element_type=jnp.float32)
        m_sc[...] = m_new

    @pl.when(ki == pl.num_programs(2) - 1)
    def _finalize():
        inv_l = pl.reciprocal(l_sc[...], approx=True)   # EUP slot, not VPU divide
        o_ref[0] = (acc_sc[...] * inv_l).astype(o_ref.dtype)


def _attn_out_ffn_kernel(x_ref, a_ref, wo_ref, bo_ref, g_ref, be_ref,
                         w1_ref, b1_ref, w2_ref, b2_ref, o_ref):
    """Single K=D out-projection + residual, pre-norm FFN + residual,
    all on a (token_tile, D) slab."""
    x = x_ref[...].astype(jnp.float32)
    x = x + _mm(a_ref[...], wo_ref[...]) + bo_ref[...]          # attn out-proj + res
    h = _layer_norm(x, g_ref[...], be_ref[...])
    f = jnp.maximum(_mm(h, w1_ref[...]) + b1_ref[...], 0.0)     # relu FFN
    x = x + _mm(f, w2_ref[...]) + b2_ref[...]
    o_ref[...] = x.astype(o_ref.dtype)


def _head_kernel(x_ref, w_ref, b_ref, o_ref):
    """relu THEN fc_out (exactly as the module), tiled over (token, vocab)."""
    x = jnp.maximum(x_ref[...].astype(jnp.float32), 0.0)
    o_ref[...] = (_mm(x, w_ref[...]) + b_ref[...]).astype(o_ref.dtype)


# ------------------------------ pallas_call wrappers ----------------------------

def _ln_qkv(x2d, lp, tile):
    n, d = x2d.shape
    act = pl.BlockSpec((tile, d), lambda i: (i, 0))
    out = jax.ShapeDtypeStruct((n, d), jnp.bfloat16)
    return pl.pallas_call(
        _ln_qkv_kernel,
        grid=(n // tile,),
        in_specs=[act, _resident((1, d)), _resident((1, d)),
                  _resident((d, d)), _resident((1, d)),
                  _resident((d, d)), _resident((1, d)),
                  _resident((d, d)), _resident((1, d))],
        out_specs=[act, act, act],
        out_shape=[out, out, out],
        compiler_params=pltpu.CompilerParams(dimension_semantics=("parallel",)),
    )(x2d, lp['g1'], lp['be1'],
      lp['w_q'], lp['b_q'], lp['w_k'], lp['b_k'], lp['w_v'], lp['b_v'])


def _flash_attention(q, k, v, scale, tq, tk):
    bh, s, dh = q.shape
    q_spec = pl.BlockSpec((1, tq, dh), lambda b, i, j: (b, i, 0))
    kv_spec = pl.BlockSpec((1, tk, dh), lambda b, i, j: (b, j, 0))
    return pl.pallas_call(
        partial(_flash_attn_kernel, scale=scale, tq=tq, tk=tk),
        grid=(bh, s // tq, s // tk),
        in_specs=[q_spec, kv_spec, kv_spec],
        out_specs=q_spec,
        out_shape=jax.ShapeDtypeStruct((bh, s, dh), jnp.bfloat16),
        scratch_shapes=[pltpu.VMEM((tq, 1), jnp.float32),    # running max
                        pltpu.VMEM((tq, 1), jnp.float32),    # running sum
                        pltpu.VMEM((tq, dh), jnp.float32)],  # accumulator
        compiler_params=pltpu.CompilerParams(
            dimension_semantics=("parallel", "parallel", "arbitrary")),
    )(q, k, v)


def _attn_out_ffn(x2d, attn2d, lp, tile):
    n, d = x2d.shape
    dff = lp['w1'].shape[0]
    act = pl.BlockSpec((tile, d), lambda i: (i, 0))
    return pl.pallas_call(
        _attn_out_ffn_kernel,
        grid=(n // tile,),
        in_specs=[act, act,
                  _resident((d, d)), _resident((1, d)),
                  _resident((1, d)), _resident((1, d)),
                  _resident((dff, d)), _resident((1, dff)),
                  _resident((d, dff)), _resident((1, d))],
        out_specs=act,
        out_shape=jax.ShapeDtypeStruct((n, d), jnp.float32),
        compiler_params=pltpu.CompilerParams(dimension_semantics=("parallel",)),
    )(x2d, attn2d, lp['w_o'], lp['b_o'], lp['g2'], lp['be2'],
      lp['w1'], lp['b1'], lp['w2'], lp['b2'])


def _lm_head(x2d, w_out, b_out, t_tile, v_tile):
    n, d = x2d.shape
    v = w_out.shape[0]
    return pl.pallas_call(
        _head_kernel,
        grid=(n // t_tile, v // v_tile),
        in_specs=[pl.BlockSpec((t_tile, d), lambda i, j: (i, 0)),
                  pl.BlockSpec((v_tile, d), lambda i, j: (j, 0)),
                  pl.BlockSpec((1, v_tile), lambda i, j: (0, j))],
        out_specs=pl.BlockSpec((t_tile, v_tile), lambda i, j: (i, j)),
        out_shape=jax.ShapeDtypeStruct((n, v), jnp.float32),
        compiler_params=pltpu.CompilerParams(
            dimension_semantics=("parallel", "parallel")),
    )(x2d, w_out, b_out)


# ------------------------------- parameter setup --------------------------------

def _xavier_uniform(key, shape):
    fan_out, fan_in = shape
    bound = math.sqrt(6.0 / (fan_in + fan_out))
    return jax.random.uniform(key, shape, jnp.float32, -bound, bound)


def _sinusoidal_pe(max_len, d_model):
    position = jnp.arange(max_len, dtype=jnp.float32)[:, None]
    div_term = jnp.exp(jnp.arange(0, d_model, 2, dtype=jnp.float32)
                       * -(math.log(10000.0) / d_model))
    pe = jnp.zeros((max_len, d_model), jnp.float32)
    pe = pe.at[:, 0::2].set(jnp.sin(position * div_term))
    pe = pe.at[:, 1::2].set(jnp.cos(position * div_term))
    return pe


def init_params(key, vocab_size, d_model, n_head, n_layer, max_len, d_ff=2048):
    keys = iter(jax.random.split(key, 2 + 4 * n_layer))
    D = d_model
    params = {
        'n_head': n_head,
        # NOTE: like the PyTorch module, _initialize_weights re-inits the whole
        # embedding table, so the padding_idx row is NOT kept at zero.
        'embedding': _xavier_uniform(next(keys), (vocab_size, D)),
        'pos_encoding': _sinusoidal_pe(max_len, D),
        'w_out': _xavier_uniform(next(keys), (vocab_size, D)).astype(jnp.bfloat16),
        'b_out': jnp.zeros((1, vocab_size), jnp.float32),
        'layers': [],
    }
    for _ in range(n_layer):
        w_in = _xavier_uniform(next(keys), (3 * D, D))   # in_proj_weight, xavier'd whole
        lp = {
            'w_q': w_in[0:D].astype(jnp.bfloat16),
            'w_k': w_in[D:2 * D].astype(jnp.bfloat16),
            'w_v': w_in[2 * D:3 * D].astype(jnp.bfloat16),
            'b_q': jnp.zeros((1, D), jnp.float32),
            'b_k': jnp.zeros((1, D), jnp.float32),
            'b_v': jnp.zeros((1, D), jnp.float32),
            'w_o': _xavier_uniform(next(keys), (D, D)).astype(jnp.bfloat16),
            'b_o': jnp.zeros((1, D), jnp.float32),
            'w1': _xavier_uniform(next(keys), (d_ff, D)).astype(jnp.bfloat16),
            'b1': jnp.zeros((1, d_ff), jnp.float32),
            'w2': _xavier_uniform(next(keys), (D, d_ff)).astype(jnp.bfloat16),
            'b2': jnp.zeros((1, D), jnp.float32),
            'g1': jnp.ones((1, D), jnp.float32),
            'be1': jnp.zeros((1, D), jnp.float32),
            'g2': jnp.ones((1, D), jnp.float32),
            'be2': jnp.zeros((1, D), jnp.float32),
        }
        params['layers'].append(lp)
    return params


# --------------------------------- forward pass ---------------------------------

def _tile_and_pad(n, target):
    """Single block if n <= target, else tile = target (multiple of 8/128) with padding."""
    if n <= target:
        return n, n
    tile = target
    return tile, -(-n // tile) * tile


def transformer_lm_forward(tokens, params):
    emb = params['embedding']          # (V, D) f32
    pe = params['pos_encoding']        # (max_len, D) f32
    B, S = tokens.shape
    V, D = emb.shape
    H = params['n_head']
    dh = D // H
    N = B * S
    scale = 1.0 / math.sqrt(dh)

    # TODO(synk): embedding row gather + PE add stay in plain JAX (data-dependent
    # gather glue); dropout layers are identity in eval mode.
    x2d = (emb[tokens] + pe[None, :S, :]).astype(jnp.float32).reshape(N, D)

    t_tile, n_pad = _tile_and_pad(N, TOKEN_TILE_TARGET)
    sq_tile, s_pad_to = _tile_and_pad(S, SEQ_TILE_TARGET)
    pad_n = n_pad - N
    pad_s = s_pad_to - S

    def pad_rows(a):
        return a if pad_n == 0 else jnp.pad(a, ((0, pad_n), (0, 0)))

    def unpad_rows(a):
        return a if pad_n == 0 else a[:N]

    def pad_seq(a):
        return a if pad_s == 0 else jnp.pad(a, ((0, 0), (0, pad_s), (0, 0)))

    def split_heads(a):    # (N, D) -> (B*H, S, dh)
        return a.reshape(B, S, H, dh).transpose(0, 2, 1, 3).reshape(B * H, S, dh)

    def merge_heads(a):    # (B*H, S, dh) -> (N, D)
        return a.reshape(B, H, S, dh).transpose(0, 2, 1, 3).reshape(N, D)

    for lp in params['layers']:
        # 1) pre-norm + QKV projection (token-tiled, resident bf16 weights)
        q2d, k2d, v2d = _ln_qkv(pad_rows(x2d), lp, t_tile)
        q2d, k2d, v2d = unpad_rows(q2d), unpad_rows(k2d), unpad_rows(v2d)

        # 2) causal flash attention over (B*H, S, dh)
        q = pad_seq(split_heads(q2d))
        k = pad_seq(split_heads(k2d))
        v = pad_seq(split_heads(v2d))
        attn = _flash_attention(q, k, v, scale, sq_tile, sq_tile)
        if pad_s:
            attn = attn[:, :S]
        attn2d = merge_heads(attn)

        # 3) out-proj + residual, pre-norm FFN + residual (token-tiled)
        x2d = unpad_rows(_attn_out_ffn(pad_rows(x2d), pad_rows(attn2d), lp, t_tile))

    # relu then fc_out, tiled over (token tile, lane-dense vocab tile)
    v_tile, v_pad_to = _tile_and_pad(V, VOCAB_TILE_TARGET)
    w_out, b_out = params['w_out'], params['b_out']
    if v_pad_to != V:
        w_out = jnp.pad(w_out, ((0, v_pad_to - V), (0, 0)))
        b_out = jnp.pad(b_out, ((0, 0), (0, v_pad_to - V)))
    logits = _lm_head(pad_rows(x2d), w_out, b_out, t_tile, v_tile)
    logits = unpad_rows(logits)[:, :V].reshape(B, S, V)
    return logits


if __name__ == "__main__":
    vocab_size, d_model, n_head, n_layer = 64, 32, 4, 2
    max_len, padding_idx = 16, 0
    B, S = 2, 8

    key = jax.random.PRNGKey(0)
    pkey, tkey = jax.random.split(key)
    params = init_params(pkey, vocab_size, d_model, n_head, n_layer, max_len)
    tokens = jax.random.randint(tkey, (B, S), 0, vocab_size, dtype=jnp.int32)

    logits = transformer_lm_forward(tokens, params)
    logits = jax.block_until_ready(logits)

    assert logits.shape == (B, S, vocab_size), logits.shape
    assert bool(jnp.all(jnp.isfinite(logits)))
    print("KERNEL_OK")
</pallas_src>

<mosaic_0001>
module attributes {stable_mosaic.version = 11 : i64} {
  func.func @_ln_qkv_kernel(%arg0: i32, %arg1: memref<16x32xf32, #tpu.memory_space<vmem>>, %arg2: memref<1x32xf32, #tpu.memory_space<vmem>>, %arg3: memref<1x32xf32, #tpu.memory_space<vmem>>, %arg4: memref<32x32xbf16, #tpu.memory_space<vmem>>, %arg5: memref<1x32xf32, #tpu.memory_space<vmem>>, %arg6: memref<32x32xbf16, #tpu.memory_space<vmem>>, %arg7: memref<1x32xf32, #tpu.memory_space<vmem>>, %arg8: memref<32x32xbf16, #tpu.memory_space<vmem>>, %arg9: memref<1x32xf32, #tpu.memory_space<vmem>>, %arg10: memref<16x32xbf16, #tpu.memory_space<vmem>>, %arg11: memref<16x32xbf16, #tpu.memory_space<vmem>>, %arg12: memref<16x32xbf16, #tpu.memory_space<vmem>>) attributes {dimension_semantics = [#tpu.dimension_semantics<parallel>], iteration_bounds = array<i64: 1>, scalar_prefetch = 0 : i64, scratch_operands = 0 : i64, tpu.core_type = #tpu.core_type<tc>, window_params = [{transform_indices = @transform_0, window_bounds = array<i64: 16, 32>}, {pipeline_mode = #tpu.pipeline_mode<synchronous>, transform_indices = @transform_1, window_bounds = array<i64: 1, 32>}, {pipeline_mode = #tpu.pipeline_mode<synchronous>, transform_indices = @transform_2, window_bounds = array<i64: 1, 32>}, {pipeline_mode = #tpu.pipeline_mode<synchronous>, transform_indices = @transform_3, window_bounds = array<i64: 32, 32>}, {pipeline_mode = #tpu.pipeline_mode<synchronous>, transform_indices = @transform_4, window_bounds = array<i64: 1, 32>}, {pipeline_mode = #tpu.pipeline_mode<synchronous>, transform_indices = @transform_5, window_bounds = array<i64: 32, 32>}, {pipeline_mode = #tpu.pipeline_mode<synchronous>, transform_indices = @transform_6, window_bounds = array<i64: 1, 32>}, {pipeline_mode = #tpu.pipeline_mode<synchronous>, transform_indices = @transform_7, window_bounds = array<i64: 32, 32>}, {pipeline_mode = #tpu.pipeline_mode<synchronous>, transform_indices = @transform_8, window_bounds = array<i64: 1, 32>}, {transform_indices = @transform_9, window_bounds = array<i64: 16, 32>}, {transform_indices = @transform_10, window_bounds = array<i64: 16, 32>}, {transform_indices = @transform_11, window_bounds = array<i64: 16, 32>}]} {
    %c0 = arith.constant 0 : index
    %c0_0 = arith.constant 0 : index
    %0 = vector.load %arg1[%c0, %c0_0] : memref<16x32xf32, #tpu.memory_space<vmem>>, vector<16x32xf32>
    %c0_1 = arith.constant 0 : index
    %c0_2 = arith.constant 0 : index
    %1 = vector.load %arg2[%c0_1, %c0_2] : memref<1x32xf32, #tpu.memory_space<vmem>>, vector<1x32xf32>
    %c0_3 = arith.constant 0 : index
    %c0_4 = arith.constant 0 : index
    %2 = vector.load %arg3[%c0_3, %c0_4] : memref<1x32xf32, #tpu.memory_space<vmem>>, vector<1x32xf32>
    %cst = arith.constant dense<0.000000e+00> : vector<16xf32>
    %3 = vector.multi_reduction <add>, %0, %cst [1] : vector<16x32xf32> to vector<16xf32>
    %4 = vector.shape_cast %3 : vector<16xf32> to vector<16x1xf32>
    %cst_5 = arith.constant 3.200000e+01 : f32
    %5 = vector.broadcast %cst_5 : f32 to vector<16x1xf32>
    %6 = arith.divf %4, %5 : vector<16x1xf32>
    %7 = vector.broadcast %6 : vector<16x1xf32> to vector<16x32xf32>
    %8 = arith.subf %0, %7 : vector<16x32xf32>
    %9 = arith.mulf %8, %8 : vector<16x32xf32>
    %cst_6 = arith.constant dense<0.000000e+00> : vector<16xf32>
    %10 = vector.multi_reduction <add>, %9, %cst_6 [1] : vector<16x32xf32> to vector<16xf32>
    %11 = vector.shape_cast %10 : vector<16xf32> to vector<16x1xf32>
    %cst_7 = arith.constant 3.200000e+01 : f32
    %12 = vector.broadcast %cst_7 : f32 to vector<16x1xf32>
    %13 = arith.divf %11, %12 : vector<16x1xf32>
    %14 = vector.broadcast %6 : vector<16x1xf32> to vector<16x32xf32>
    %15 = arith.subf %0, %14 : vector<16x32xf32>
    %cst_8 = arith.constant 9.99999974E-6 : f32
    %16 = vector.broadcast %cst_8 : f32 to vector<16x1xf32>
    %17 = arith.addf %13, %16 : vector<16x1xf32>
    %18 = math.rsqrt %17 : vector<16x1xf32>
    %19 = vector.broadcast %18 : vector<16x1xf32> to vector<16x32xf32>
    %20 = arith.mulf %15, %19 : vector<16x32xf32>
    %21 = vector.broadcast %1 : vector<1x32xf32> to vector<16x32xf32>
    %22 = arith.mulf %20, %21 : vector<16x32xf32>
    %23 = vector.broadcast %2 : vector<1x32xf32> to vector<16x32xf32>
    %24 = arith.addf %22, %23 : vector<16x32xf32>
    %c0_9 = arith.constant 0 : index
    %c0_10 = arith.constant 0 : index
    %25 = vector.load %arg4[%c0_9, %c0_10] : memref<32x32xbf16, #tpu.memory_space<vmem>>, vector<32x32xbf16>
    %26 = arith.truncf %24 : vector<16x32xf32> to vector<16x32xbf16>
    %cst_11 = arith.constant dense<0.000000e+00> : vector<16x32xf32>
    %27 = tpu.matmul %26, %25, %cst_11 {dimension_numbers = #tpu.dot_dimension_numbers<[1], [1], [0], [0], [0, 0, 1, 0], [], []>} : vector<16x32xbf16>, vector<32x32xbf16>, vector<16x32xf32> -> vector<16x32xf32>
    %c0_12 = arith.constant 0 : index
    %c0_13 = arith.constant 0 : index
    %28 = vector.load %arg5[%c0_12, %c0_13] : memref<1x32xf32, #tpu.memory_space<vmem>>, vector<1x32xf32>
    %29 = vector.broadcast %28 : vector<1x32xf32> to vector<16x32xf32>
    %30 = arith.addf %27, %29 : vector<16x32xf32>
    %31 = arith.truncf %30 : vector<16x32xf32> to vector<16x32xbf16>
    %c0_14 = arith.constant 0 : index
    %c0_15 = arith.constant 0 : index
    %32 = vector.load %arg10[%c0_14, %c0_15] : memref<16x32xbf16, #tpu.memory_space<vmem>>, vector<16x32xbf16>
    tpu.vector_store %arg10[%c0_14, %c0_15], %31 {strides = array<i32>} : memref<16x32xbf16, #tpu.memory_space<vmem>>, vector<16x32xbf16>,
    %c0_16 = arith.constant 0 : index
    %c0_17 = arith.constant 0 : index
    %33 = vector.load %arg6[%c0_16, %c0_17] : memref<32x32xbf16, #tpu.memory_space<vmem>>, vector<32x32xbf16>
    %34 = arith.truncf %24 : vector<16x32xf32> to vector<16x32xbf16>
    %cst_18 = arith.constant dense<0.000000e+00> : vector<16x32xf32>
    %35 = tpu.matmul %34, %33, %cst_18 {dimension_numbers = #tpu.dot_dimension_numbers<[1], [1], [0], [0], [0, 0, 1, 0], [], []>} : vector<16x32xbf16>, vector<32x32xbf16>, vector<16x32xf32> -> vector<16x32xf32>
    %c0_19 = arith.constant 0 : index
    %c0_20 = arith.constant 0 : index
    %36 = vector.load %arg7[%c0_19, %c0_20] : memref<1x32xf32, #tpu.memory_space<vmem>>, vector<1x32xf32>
    %37 = vector.broadcast %36 : vector<1x32xf32> to vector<16x32xf32>
    %38 = arith.addf %35, %37 : vector<16x32xf32>
    %39 = arith.truncf %38 : vector<16x32xf32> to vector<16x32xbf16>
    %c0_21 = arith.constant 0 : index
    %c0_22 = arith.constant 0 : index
    %40 = vector.load %arg11[%c0_21, %c0_22] : memref<16x32xbf16, #tpu.memory_space<vmem>>, vector<16x32xbf16>
    tpu.vector_store %arg11[%c0_21, %c0_22], %39 {strides = array<i32>} : memref<16x32xbf16, #tpu.memory_space<vmem>>, vector<16x32xbf16>,
    %c0_23 = arith.constant 0 : index
    %c0_24 = arith.constant 0 : index
    %41 = vector.load %arg8[%c0_23, %c0_24] : memref<32x32xbf16, #tpu.memory_space<vmem>>, vector<32x32xbf16>
    %42 = arith.truncf %24 : vector<16x32xf32> to vector<16x32xbf16>
    %cst_25 = arith.constant dense<0.000000e+00> : vector<16x32xf32>
    %43 = tpu.matmul %42, %41, %cst_25 {dimension_numbers = #tpu.dot_dimension_numbers<[1], [1], [0], [0], [0, 0, 1, 0], [], []>} : vector<16x32xbf16>, vector<32x32xbf16>, vector<16x32xf32> -> vector<16x32xf32>
    %c0_26 = arith.constant 0 : index
    %c0_27 = arith.constant 0 : index
    %44 = vector.load %arg9[%c0_26, %c0_27] : memref<1x32xf32, #tpu.memory_space<vmem>>, vector<1x32xf32>
    %45 = vector.broadcast %44 : vector<1x32xf32> to vector<16x32xf32>
    %46 = arith.addf %43, %45 : vector<16x32xf32>
    %47 = arith.truncf %46 : vector<16x32xf32> to vector<16x32xbf16>
    %c0_28 = arith.constant 0 : index
    %c0_29 = arith.constant 0 : index
    %48 = vector.load %arg12[%c0_28, %c0_29] : memref<16x32xbf16, #tpu.memory_space<vmem>>, vector<16x32xbf16>
    tpu.vector_store %arg12[%c0_28, %c0_29], %47 {strides = array<i32>} : memref<16x32xbf16, #tpu.memory_space<vmem>>, vector<16x32xbf16>,
    return
  }
  func.func @transform_0(%arg0: i32) -> (i32, i32) {
    %c0_i32 = arith.constant 0 : i32
    %c0_i32_0 = arith.constant 0 : i32
    return %arg0, %c0_i32 : i32, i32
  }
  func.func @transform_1(%arg0: i32) -> (i32, i32) {
    %c0_i32 = arith.constant 0 : i32
    %c0_i32_0 = arith.constant 0 : i32
    %c0_i32_1 = arith.constant 0 : i32
    return %c0_i32, %c0_i32_0 : i32, i32
  }
  func.func @transform_2(%arg0: i32) -> (i32, i32) {
    %c0_i32 = arith.constant 0 : i32
    %c0_i32_0 = arith.constant 0 : i32
    %c0_i32_1 = arith.constant 0 : i32
    return %c0_i32, %c0_i32_0 : i32, i32
  }
  func.func @transform_3(%arg0: i32) -> (i32, i32) {
    %c0_i32 = arith.constant 0 : i32
    %c0_i32_0 = arith.constant 0 : i32
    %c0_i32_1 = arith.constant 0 : i32
    return %c0_i32, %c0_i32_0 : i32, i32
  }
  func.func @transform_4(%arg0: i32) -> (i32, i32) {
    %c0_i32 = arith.constant 0 : i32
    %c0_i32_0 = arith.constant 0 : i32
    %c0_i32_1 = arith.constant 0 : i32
    return %c0_i32, %c0_i32_0 : i32, i32
  }
  func.func @transform_5(%arg0: i32) -> (i32, i32) {
    %c0_i32 = arith.constant 0 : i32
    %c0_i32_0 = arith.constant 0 : i32
    %c0_i32_1 = arith.constant 0 : i32
    return %c0_i32, %c0_i32_0 : i32, i32
  }
  func.func @transform_6(%arg0: i32) -> (i32, i32) {
    %c0_i32 = arith.constant 0 : i32
    %c0_i32_0 = arith.constant 0 : i32
    %c0_i32_1 = arith.constant 0 : i32
    return %c0_i32, %c0_i32_0 : i32, i32
  }
  func.func @transform_7(%arg0: i32) -> (i32, i32) {
    %c0_i32 = arith.constant 0 : i32
    %c0_i32_0 = arith.constant 0 : i32
    %c0_i32_1 = arith.constant 0 : i32
    return %c0_i32, %c0_i32_0 : i32, i32
  }
  func.func @transform_8(%arg0: i32) -> (i32, i32) {
    %c0_i32 = arith.constant 0 : i32
    %c0_i32_0 = arith.constant 0 : i32
    %c0_i32_1 = arith.constant 0 : i32
    return %c0_i32, %c0_i32_0 : i32, i32
  }
  func.func @transform_9(%arg0: i32) -> (i32, i32) {
    %c0_i32 = arith.constant 0 : i32
    %c0_i32_0 = arith.constant 0 : i32
    return %arg0, %c0_i32 : i32, i32
  }
  func.func @transform_10(%arg0: i32) -> (i32, i32) {
    %c0_i32 = arith.constant 0 : i32
    %c0_i32_0 = arith.constant 0 : i32
    return %arg0, %c0_i32 : i32, i32
  }
  func.func @transform_11(%arg0: i32) -> (i32, i32) {
    %c0_i32 = arith.constant 0 : i32
    %c0_i32_0 = arith.constant 0 : i32
    return %arg0, %c0_i32 : i32, i32
  }
}

</mosaic_0001>

<bundles_post_ra>
// kernel: tpu_custom_call.1
= control target key start
LH: loop header
LB: loop body
LE: loop exit
PB: predicated region body
PF: predicated region fallthrough
CT: control target
= control target key end

     0   :  { %17 = vsyncpa [#allocation3], 0  ;;  %s772_s0 = inlined_call_operand.hbm [shape: f32[16,32], index: 0, kind: input, shape index: {}]   ;;  %s773_s1 = inlined_call_operand.hbm [shape: f32[1,32], index: 1, kind: input, shape index: {}]   ;;  %s774_s2 = inlined_call_operand.vmem [shape: f32[1,32], index: 2, kind: input, shape index: {}]   ;;  %s775_s3 = inlined_call_operand.hbm [shape: bf16[32,32], index: 3, kind: input, shape index: {}]   ;;  %s776_s4 = inlined_call_operand.vmem [shape: f32[1,32], index: 4, kind: input, shape index: {}]   ;;  %s777_s5 = inlined_call_operand.hbm [shape: bf16[32,32], index: 5, kind: input, shape index: {}]   ;;  %s778_s6 = inlined_call_operand.vmem [shape: f32[1,32], index: 6, kind: input, shape index: {}]   ;;  %s779_s7 = inlined_call_operand.hbm [shape: bf16[32,32], index: 7, kind: input, shape index: {}]   ;;  %s780_s8 = inlined_call_operand.vmem [shape: f32[1,32], index: 8, kind: input, shape index: {}]   ;;  %s781_s9 = inlined_call_operand.hbm [shape: bf16[16,32], index: 9, kind: output, shape index: {0}]   ;;  %s782_s10 = inlined_call_operand.hbm [shape: bf16[16,32], index: 10, kind: output, shape index: {1}]   ;;  %s783_s11 = inlined_call_operand.hbm [shape: bf16[16,32], index: 11, kind: output, shape index: {2}]  }
   0x1   :  { %18 = vsyncpa [#allocation6], 0 }
   0x2   :  { %19 = vsyncpa [#allocation9], 0 }
   0x3   :  { %20 = vsyncpa [#allocation4], 0  ;;  %s40_s19 = sshll.u32 %s773_s1, 4  ;;  %s41_s19 = int_to_ptr.hbm [resolvable:$true] %s40_s19 }
   0x4   :  { %21 = vsyncpa [#allocation13], 0  ;;  %s626_s20 = smov [#allocation5]   ;;  %s67_s24 = sshll.u32 %s777_s5, 4  ;;  %s68_s24 = int_to_ptr.hbm [resolvable:$true] %s67_s24 }
   0x5   :  { %s42_s21 = sshll.u32 %s626_s20, 4  ;;  %s627_s25 = smov [#allocation8]   ;;  %s43_s21 = int_to_ptr.vmem [resolvable:$true] %s42_s21 }
   0x6   :  { %45 = dma.hbm_to_vmem [thread:$0]  %s41_s19, 16, %s43_s21, [#allocation6]  }
   0x7   :  { %s69_s26 = sshll.u32 %s627_s25, 4  ;;  %s26_s29 = sshll.u32 %s772_s0, 4  ;;  %s70_s26 = int_to_ptr.vmem [resolvable:$true] %s69_s26  ;;  %s27_s29 = int_to_ptr.hbm [resolvable:$true] %s26_s29 }
   0x8   :  { %s628_s1 = smov 64   ;;  %s629_s30 = smov 4  }
   0x9   :  { %75 = dma.hbm_to_vmem [thread:$0]  %s68_s24, 256, %s70_s26, [#allocation9], %s628_s1, %s628_s1, %s629_s30  }
   0xa   :  { %s630_s12 = smov [#allocation2]   ;;  %s52_s15 = sshll.u32 %s775_s3, 4  ;;  %s53_s15 = int_to_ptr.hbm [resolvable:$true] %s52_s15 }
   0xb   :  { %s28_s13 = sshll.u32 %s630_s12, 4  ;;  %s631_s16 = smov 128   ;;  %s29_s13 = int_to_ptr.vmem [resolvable:$true] %s28_s13 }
   0xc   :  { %s632_s17 = smov 8   ;;  %s633_s0 = smov [#allocation7]  }
   0xd   :  { %34 = dma.hbm_to_vmem [thread:$0]  %s27_s29, 256, %s29_s13, [#allocation3], %s631_s16, %s631_s16, %s632_s17  }
   0xe   :  { %s54_s18 = sshll.u32 %s633_s0, 4  ;;  %s82_s21 = sshll.u32 %s779_s7, 4  ;;  %s55_s18 = int_to_ptr.vmem [resolvable:$true] %s54_s18  ;;  %s83_s21 = int_to_ptr.hbm [resolvable:$true] %s82_s21 }
   0xf   :  { %60 = dma.hbm_to_vmem [thread:$0]  %s53_s15, 256, %s55_s18, [#allocation6], %s628_s1, %s628_s1, %s629_s30  }
  0x10   :  { %s634_s22 = smov [#allocation10]  }
  0x11   :  { %s84_s23 = sshll.u32 %s634_s22, 4  ;;  %s85_s23 = int_to_ptr.vmem [resolvable:$true] %s84_s23 }
  0x12   :  { %90 = dma.hbm_to_vmem [thread:$0]  %s83_s21, 256, %s85_s23, [#allocation9], %s628_s1, %s628_s1, %s629_s30  }
  0x13   :  { %616 = dma.done.wait [#allocation3], 256  }
  0x14   :  { %617 = vsyncadd [#allocation3], 4294967040 }
  0x15   :  { %618 = dma.done.wait [#allocation6], 272  }
  0x16   :  { %619 = vsyncadd [#allocation6], 4294967024 }
  0x17   :  { %620 = dma.done.wait [#allocation9], 512  }
  0x18   :  { %621 = vsyncadd [#allocation9], 4294966784  ;;  %vm118_vm0 = vcmask 261120   ;;  %v114_v0 = vld [vmem:[#allocation2] sm:$0xff]  ;;  %v115_v2 = vld [vmem:[#allocation2 + $0x8] sm:$0xff]  ;;  %v635_v4 = vmov 32.0  }
  0x19   :  { %v119_v1 = vsel %vm118_vm0, %v114_v0, 0.0  ;;  %v122_v3 = vsel %vm118_vm0, %v115_v2, 0.0  ;;  %418 = vrcp.f32 %v635_v4  ;;  %v395_v21 = vld [vmem:[#allocation7 + $0x8] sm:$0xff]  ;;  %v397_v22 = vld [vmem:[#allocation8 + $0x8] sm:$0xff]  ;;  %v394_v27 = vld [vmem:[#allocation7] sm:$0xff]  ;;  %vm224_vm8 = vcmask 257024  }
  0x1a   :  { %120 = vadd.xlane.f32.xlu0 %v119_v1  ;;  %v399_v23 = vld [vmem:[#allocation10 + $0x8] sm:$0xff]  ;;  %v206_v24 = vsel %vm118_vm0, %v395_v21, 0  ;;  %v249_v25 = vsel %vm118_vm0, %v397_v22, 0  ;;  %v396_v28 = vld [vmem:[#allocation8] sm:$0xff]  ;;  %v398_v29 = vld [vmem:[#allocation10] sm:$0xff]  ;;  %v203_v30 = vsel %vm118_vm0, %v394_v27, 0 }
  0x1b   :  { %v291_v26 = vsel %vm118_vm0, %v399_v23, 0  ;;  %214 = vmatpush.bf16.xpose.msra.mxu0 %v206_v24  ;;  %257 = vmatpush.bf16.xpose.msra.mxu1 %v249_v25  ;;  %v246_v31 = vsel %vm118_vm0, %v396_v28, 0  ;;  %v288_v32 = vsel %vm118_vm0, %v398_v29, 0  ;;  %v413_v52 = vld [vmem:[#allocation5] ss:$0 sm:$0xff]  ;;  %s317_s13 = sshll.u32 %s781_s9, 4  ;;  %s318_s13 = int_to_ptr.hbm [resolvable:$true] %s317_s13 }
  0x1c   :  { %299 = vmatpush.bf16.xpose.msra.mxu2 %v291_v26  ;;  %v414_v57 = vld [vmem:[%s774_s2] ss:$0 sm:$0xff]  ;;  %s637_s14 = smov [#allocation12]   ;;  %s330_s16 = sshll.u32 %s782_s10, 4  ;;  %s331_s16 = int_to_ptr.hbm [resolvable:$true] %s330_s16 }
  0x1d   :  { %v415_v62 = vld [vmem:[%s776_s4] ss:$0 sm:$0xff]  ;;  %s636_s4 = smov [#allocation11]   ;;  %s328_s5 = sshll.u32 %s637_s14, 4  ;;  %s329_s5 = int_to_ptr.vmem [resolvable:$true] %s328_s5 }
  0x1e   :  { %v416_v63 = vld [vmem:[%s778_s6] ss:$0 sm:$0xff]  ;;  %s315_s6 = sshll.u32 %s636_s4, 4  ;;  %s638_s9 = smov [#allocation14]   ;;  %s316_s6 = int_to_ptr.vmem [resolvable:$true] %s315_s6 }
  0x1f   :  { %v419_v5 = vpop.eup %418  ;;  %s341_s17 = sshll.u32 %s638_s9, 4  ;;  %s343_s19 = sshll.u32 %s783_s11, 4  ;;  %s342_s17 = int_to_ptr.vmem [resolvable:$true] %s341_s17  ;;  %s344_s19 = int_to_ptr.hbm [resolvable:$true] %s343_s19 }
  0x20   :  { %v126_v6 = vmul.f32 32.0, %v419_v5  ;;  %vm130_vm1 = vweird.f32 %v419_v5 }
  0x22   :  { %123 = vadd.xlane.f32.xlu0 %v122_v3  ;;  %v127_v7 = vsub.f32 1.0, %v126_v6  ;;  %v417_v6 = vld [vmem:[%s780_s8] ss:$0 sm:$0xff] }
  0x23   :  { %215 = vmatpush.bf16.xpose.msra.mxu0 %v203_v30  ;;  %258 = vmatpush.bf16.xpose.msra.mxu1 %v246_v31 }
  0x24   :  { %v128_v8 = vmul.f32 %v419_v5, %v127_v7  ;;  %300 = vmatpush.bf16.xpose.msra.mxu2 %v288_v32 }
  0x26   :  { %v129_v9 = vadd.f32 %v419_v5, %v128_v8 }
  0x28   :  { %v131_v10 = vsel %vm130_vm1, %v419_v5, %v129_v9 }
  0x8d   :  { %v121_v11 = vpop.xlane.xlu0 %120 }
  0x8e   :  { %v132_v12 = vmul.f32 %v131_v10, %v121_v11 }
  0x90   :  { %v134_v13 = vsub.f32 %v114_v0, %v132_v12 }
  0x92   :  { %v136_v14 = vmul.f32 %v134_v13, %v134_v13 }
  0x94   :  { %v138_v15 = vsel %vm118_vm0, %v136_v14, 0.0 }
  0x95   :  { %139 = vadd.xlane.f32.xlu1 %v138_v15  ;;  %v124_v16 = vpop.xlane.xlu0 %123 }
  0x96   :  { %v133_v17 = vmul.f32 %v131_v10, %v124_v16 }
  0x98   :  { %v135_v18 = vsub.f32 %v115_v2, %v133_v17 }
  0x9a   :  { %v137_v19 = vmul.f32 %v135_v18, %v135_v18 }
  0x9c   :  { %v141_v20 = vsel %vm118_vm0, %v137_v19, 0.0 }
  0x9d   :  { %142 = vadd.xlane.f32.xlu1 %v141_v20 }
 0x108   :  { %v140_v33 = vpop.xlane.xlu1 %139 }
 0x109   :  { %v144_v34 = vmul.f32 %v140_v33, %v131_v10 }
 0x10b   :  { %v146_v35 = vadd.f32 1e-05, %v144_v34 }
 0x10d   :  { %420 = vrsqrt.f32 %v146_v35  ;;  %vm154_vm3 = vweird.f32 %v146_v35 }
 0x110   :  { %v143_v36 = vpop.xlane.xlu1 %142 }
 0x111   :  { %v145_v37 = vmul.f32 %v143_v36, %v131_v10 }
 0x113   :  { %v421_v38 = vpop.eup %420  ;;  %v147_v39 = vadd.f32 1e-05, %v145_v37 }
 0x114   :  { %v149_v40 = vmul.f32 %v421_v38, %v146_v35  ;;  %vm155_vm2 = vweird.f32 %v421_v38 }
 0x115   :  { %422 = vrsqrt.f32 %v147_v39  ;;  %vm156_vm4 = vmor %vm154_vm3, %vm155_vm2  ;;  %vm164_vm6 = vweird.f32 %v147_v39 }
 0x116   :  { %v150_v41 = vmul.f32 %v421_v38, %v149_v40 }
 0x118   :  { %v151_v42 = vmul.f32 0.5, %v150_v41 }
 0x11a   :  { %v152_v43 = vsub.f32 1.5, %v151_v42 }
 0x11b   :  { %v423_v44 = vpop.eup %422 }
 0x11c   :  { %v153_v45 = vmul.f32 %v421_v38, %v152_v43  ;;  %v159_v46 = vmul.f32 %v423_v44, %v147_v39  ;;  %vm165_vm5 = vweird.f32 %v423_v44 }
 0x11d   :  { %vm166_vm7 = vmor %vm164_vm6, %vm165_vm5 }
 0x11e   :  { %v160_v47 = vmul.f32 %v423_v44, %v159_v46  ;;  %v157_v48 = vsel %vm156_vm4, %v421_v38, %v153_v45 }
 0x11f   :  { %v168_v51 = vmul.f32 %v157_v48, %v134_v13 }
 0x120   :  { %v161_v49 = vmul.f32 0.5, %v160_v47 }
 0x121   :  { %v173_v56 = vmul.f32 %v413_v52, %v168_v51 }
 0x122   :  { %v162_v50 = vsub.f32 1.5, %v161_v49 }
 0x123   :  { %v178_v59 = vadd.f32 %v414_v57, %v173_v56 }
 0x124   :  { %v163_v53 = vmul.f32 %v423_v44, %v162_v50 }
 0x126   :  { %v167_v54 = vsel %vm166_vm7, %v423_v44, %v163_v53 }
 0x127   :  { %v169_v55 = vmul.f32 %v167_v54, %v135_v18 }
 0x129   :  { %v174_v58 = vmul.f32 %v413_v52, %v169_v55 }
 0x12b   :  { %v179_v60 = vadd.f32 %v414_v57, %v174_v58 }
 0x12d   :  { %v184_v61 = vpack.c.bf16 %v179_v60, %v178_v59 }
 0x12f   :  { %375 = vmatmul.msk.bf16.vlgmr.msra.gmra.mxu0 %vm118_vm0, %v184_v61  ;;  %384 = vmatmul.msk.bf16.vlgmr.msra.gmra.mxu1 %vm118_vm0, %v184_v61 }
 0x130   :  { %393 = vmatmul.msk.bf16.vlgmr.msra.gmra.mxu2 %vm118_vm0, %v184_v61 }
 0x1ac   :  { %v217_v0 = vpop.f32.mrf.mxu0  ;;  %v260_v1 = vpop.f32.mrf.mxu1 }
 0x1ad   :  { %v218_v2 = vadd.f32 %v415_v62, %v217_v0  ;;  %v261_v3 = vadd.f32 %v416_v63, %v260_v1 }
 0x1af   :  { %v222_v4 = vpack.c.bf16 %v218_v2, %v218_v2  ;;  %v265_v5 = vpack.c.bf16 %v261_v3, %v261_v3 }
 0x1b1   :  { %225 = vst.msk [vmem:[#allocation11] sm:$0xf] %vm224_vm8, %v222_v4 }
 0x1b2   :  { %267 = vst.msk [vmem:[#allocation12] sm:$0xf] %vm224_vm8, %v265_v5 }
 0x1b3   :  { %v302_v7 = vpop.f32.mrf.mxu2 }
 0x1b4   :  { %v303_v8 = vadd.f32 %v417_v6, %v302_v7  ;;  %v219_v9 = vpop.f32.mrf.mxu0  ;;  %v262_v10 = vpop.f32.mrf.mxu1 }
 0x1b5   :  { %v220_v11 = vadd.f32 %v415_v62, %v219_v9  ;;  %v263_v12 = vadd.f32 %v416_v63, %v262_v10 }
 0x1b6   :  { %v307_v13 = vpack.c.bf16 %v303_v8, %v303_v8 }
 0x1b7   :  { %v223_v14 = vpack.c.bf16 %v220_v11, %v220_v11  ;;  %v266_v15 = vpack.c.bf16 %v263_v12, %v263_v12 }
 0x1b8   :  { %309 = vst.msk [vmem:[#allocation14] sm:$0xf] %vm224_vm8, %v307_v13 }
 0x1b9   :  { %226 = vst.msk [vmem:[#allocation11 + $0x4] sm:$0xf] %vm224_vm8, %v223_v14 }
 0x1ba   :  { %268 = vst.msk [vmem:[#allocation12 + $0x4] sm:$0xf] %vm224_vm8, %v266_v15  ;;  %323 = dma.vmem_to_hbm [thread:$0]  %s316_s6, 128, %s318_s13, [#allocation4], %s628_s1, %s628_s1, %s629_s30  }
 0x1bb   :  { %v304_v16 = vpop.f32.mrf.mxu2  ;;  %336 = dma.vmem_to_hbm [thread:$0]  %s329_s5, 128, %s331_s16, [#allocation13], %s628_s1, %s628_s1, %s629_s30  }
 0x1bc   :  { %v305_v17 = vadd.f32 %v417_v6, %v304_v16 }
 0x1be   :  { %v308_v18 = vpack.c.bf16 %v305_v17, %v305_v17 }
 0x1c0   :  { %310 = vst.msk [vmem:[#allocation14 + $0x4] sm:$0xf] %vm224_vm8, %v308_v18 }
 0x1c1   :  { %349 = dma.vmem_to_hbm [thread:$0]  %s342_s17, 128, %s344_s19, [#allocation13], %s628_s1, %s628_s1, %s629_s30  }
 0x1c2   :  { %622 = dma.done.wait [#allocation4], 128  }
 0x1c3   :  { %623 = vsyncadd [#allocation4], 4294967168 }
 0x1c4   :  { %624 = dma.done.wait [#allocation13], 256  }
 0x1c5   :  { %625 = vsyncadd [#allocation13], 4294967040 }
 0x1c6   :  { %362 = vsyncpa [#allocation3], 1 }
 0x1c7   :  { %363 = vsyncpa [#allocation6], 1 }
 0x1c8   :  { %364 = vsyncpa [#allocation9], 1 }
 0x1c9   :  { %365 = vsyncpa [#allocation4], 1 }
 0x1ca   :  { %366 = vsyncpa [#allocation13], 1 }

</bundles_post_ra>
